<compile_context>
chip_gen: v7x
topology: tpu7x:2x2x1
jax: 0.10.0
libtpu: 0.0.40
codegen_flags: <defaults>
</compile_context>

<pallas_src>
import functools

import jax
import jax.numpy as jnp
import numpy as np
from jax import lax
from jax.experimental import pallas as pl
from jax.experimental.pallas import tpu as pltpu

KSIZE = 3  # main_stream(kernel=3), stride=1, dilated=1 -> pad=1


def _fused_conv_bn_kernel(x_ref, w_ref, gamma_ref, beta_ref, out_ref,
                          *, n, h, w, cin, ctot, eps):
    """Fused 3x3 conv (one im2col matmul per image) + BatchNorm (stats + apply).

    x_ref    : (N, Cin, H*W)   NCHW activations, spatial flattened (lane-dense)
    w_ref    : (Ctot, 9*Cin)   folded, channel-major im2col weights
    gamma_ref: (Ctot, 1)       BN weight
    beta_ref : (Ctot, 1)       BN bias
    out_ref  : (N, Ctot, H*W)  normalized output (free reshape to NCHW outside)
    """
    m = h * w
    pad = w + 1  # flat zero pad covers the +/-1 ROW shifts; columns use a mask

    # Column-validity masks for the +/-1 column shifts (constant per call).
    col = lax.broadcasted_iota(jnp.int32, (1, m), 1) % w
    ok_left = col >= 1           # dw = -1
    ok_right = col < (w - 1)     # dw = +1

    w_mat = w_ref[...]                                        # (Ctot, 9*Cin)
    zpad = jnp.zeros((cin, pad), jnp.float32)

    # ---- pass A: conv per image (written straight into the resident output
    #              block) + per-channel sum for the mean ---------------------
    total = jnp.zeros((ctot, 1), jnp.float32)
    for img in range(n):
        x = x_ref[img].astype(jnp.float32)                    # (Cin, M)
        xp = jnp.concatenate([zpad, x, zpad], axis=1)         # (Cin, M + 2*(W+1))
        slabs = []
        for dh in (-1, 0, 1):
            for dw in (-1, 0, 1):
                start = pad + dh * w + dw
                sl = xp[:, start:start + m]                   # static lane slice
                if dw == 1:
                    sl = jnp.where(ok_right, sl, 0.0)
                elif dw == -1:
                    sl = jnp.where(ok_left, sl, 0.0)
                slabs.append(sl)
        patches = jnp.concatenate(slabs, axis=0)              # (9*Cin, M)
        # Note: operands kept f32 so the result matches the f32 reference at
        # tight tolerance; on v6e, bf16 operands (f32 accumulate) are a free
        # MXU win if a looser tolerance is acceptable.
        conv = jnp.dot(w_mat, patches,
                       preferred_element_type=jnp.float32)    # (Ctot, M)
        out_ref[img] = conv                                   # lane-dense store
        total = total + jnp.sum(conv, axis=1, keepdims=True)

    # ---- pass B: BN statistics (two-pass, biased variance, training mode) --
    inv_cnt = 1.0 / float(n * m)
    mean = total * inv_cnt                                    # (Ctot, 1)
    var_acc = jnp.zeros((ctot, 1), jnp.float32)
    for img in range(n):
        d = out_ref[img] - mean
        var_acc = var_acc + jnp.sum(d * d, axis=1, keepdims=True)
    var = var_acc * inv_cnt
    scale = gamma_ref[...] * lax.rsqrt(var + eps)             # (Ctot, 1)
    shift = beta_ref[...] - mean * scale                      # (Ctot, 1)

    # ---- pass C: apply (lane-broadcast FMA on the resident output block) ---
    for img in range(n):
        out_ref[img] = out_ref[img] * scale + shift


def main_stream_forward(x_nchw, weights, gamma, beta, eps=1e-3):
    """x_nchw: (N, Cin, H, W); weights: list of HWIO (3,3,Cin,Cout_k); gamma/beta: (Ctot,).

    Equivalent to the PyTorch module forward:
      t_k = conv2d(x, w_k, padding=1, bias=False)
      cat([t1, t2, t2+t3, ...], dim=1) -> BatchNorm2d (batch statistics).
    Conv is linear, so the add-chain is folded into the weights and the whole
    module becomes one conv + one BN, fused in a single Pallas call.
    """
    n, cin, h, w = x_nchw.shape
    couts = [int(wk.shape[-1]) for wk in weights]
    ctot = sum(couts)
    m = h * w

    x_flat = x_nchw.reshape(n, cin, m).astype(jnp.float32)        # free reshape

    # Fold the main_stream add-chain into the weights, channel-major layout.
    ws = [wk.astype(jnp.float32) for wk in weights]
    branches = []
    for i, wk in enumerate(ws):
        branches.append(wk if i <= 1 else branches[i - 1] + wk)
    w_comb = jnp.concatenate(branches, axis=-1)                   # (3,3,Cin,Ctot)
    w_t = w_comb.reshape(KSIZE * KSIZE * cin, ctot).T             # (Ctot, 9*Cin)

    gamma_c = gamma.astype(jnp.float32).reshape(ctot, 1)
    beta_c = beta.astype(jnp.float32).reshape(ctot, 1)

    kernel = functools.partial(_fused_conv_bn_kernel, n=n, h=h, w=w,
                               cin=cin, ctot=ctot, eps=float(eps))
    out_flat = pl.pallas_call(
        kernel,
        grid=(1,),
        in_specs=[
            pl.BlockSpec((n, cin, m), lambda i: (0, 0, 0)),
            pl.BlockSpec((ctot, KSIZE * KSIZE * cin), lambda i: (0, 0)),
            pl.BlockSpec((ctot, 1), lambda i: (0, 0)),
            pl.BlockSpec((ctot, 1), lambda i: (0, 0)),
        ],
        out_specs=pl.BlockSpec((n, ctot, m), lambda i: (0, 0, 0)),
        out_shape=jax.ShapeDtypeStruct((n, ctot, m), jnp.float32),
        compiler_params=pltpu.CompilerParams(
            dimension_semantics=("arbitrary",)),
    )(x_flat, w_t, gamma_c, beta_c)

    return out_flat.reshape(n, ctot, h, w)                        # already NCHW


def _reference_forward(x_nchw, weights, gamma, beta, eps=1e-3):
    """Pure-JAX reference (same math as the PyTorch module forward)."""
    x = jnp.transpose(x_nchw, (0, 2, 3, 1)).astype(jnp.float32)
    outs = [lax.conv_general_dilated(
        x, wk, window_strides=(1, 1), padding="SAME",
        dimension_numbers=("NHWC", "HWIO", "NHWC")) for wk in weights]
    branches = []
    for i, t in enumerate(outs):
        branches.append(t if i <= 1 else branches[i - 1] + t)
    cat = jnp.concatenate(branches, axis=-1)
    mean = jnp.mean(cat, axis=(0, 1, 2))
    var = jnp.mean((cat - mean) ** 2, axis=(0, 1, 2))
    y = (cat - mean) * lax.rsqrt(var + eps) * gamma + beta
    return jnp.transpose(y, (0, 3, 1, 2))


if __name__ == "__main__":
    # main_stream(channel_in=4, channel_out=12, kernel=3, stride=1,
    #             channel_split=3, spatial_split=False, dilated=1)
    # -> channel_split_list = [4, 4, 4]; bn = BatchNorm2d(12, eps=1e-3)
    N, CIN, H, W = 2, 4, 16, 16
    COUT, SPLIT = 12, 3
    couts = [COUT // SPLIT] * SPLIT

    key = jax.random.PRNGKey(0)
    kx, k1, k2, k3, kg, kb = jax.random.split(key, 6)
    x = jax.random.normal(kx, (N, CIN, H, W), jnp.float32)
    weights = [
        0.1 * jax.random.normal(k, (KSIZE, KSIZE, CIN, c), jnp.float32)
        for k, c in zip((k1, k2, k3), couts)
    ]
    gamma = 1.0 + 0.1 * jax.random.normal(kg, (COUT,), jnp.float32)
    beta = 0.1 * jax.random.normal(kb, (COUT,), jnp.float32)

    out = jax.block_until_ready(main_stream_forward(x, weights, gamma, beta))
    assert out.shape == (N, COUT, H, W)

    ref = jax.block_until_ready(_reference_forward(x, weights, gamma, beta))
    np.testing.assert_allclose(np.asarray(out), np.asarray(ref),
                               rtol=2e-4, atol=2e-4)
    print("KERNEL_OK")
</pallas_src>

<mosaic_0001>
module attributes {stable_mosaic.version = 11 : i64} {
  func.func @_fused_conv_bn_kernel(%arg0: i32, %arg1: memref<2x4x256xf32, #tpu.memory_space<vmem>>, %arg2: memref<12x36xf32, #tpu.memory_space<vmem>>, %arg3: memref<12x1xf32, #tpu.memory_space<vmem>>, %arg4: memref<12x1xf32, #tpu.memory_space<vmem>>, %arg5: memref<2x12x256xf32, #tpu.memory_space<vmem>>) attributes {dimension_semantics = [#tpu.dimension_semantics<arbitrary>], iteration_bounds = array<i64: 1>, scalar_prefetch = 0 : i64, scratch_operands = 0 : i64, tpu.core_type = #tpu.core_type<tc>, window_params = [{pipeline_mode = #tpu.pipeline_mode<synchronous>, transform_indices = @transform_0, window_bounds = array<i64: 2, 4, 256>}, {pipeline_mode = #tpu.pipeline_mode<synchronous>, transform_indices = @transform_1, window_bounds = array<i64: 12, 36>}, {pipeline_mode = #tpu.pipeline_mode<synchronous>, transform_indices = @transform_2, window_bounds = array<i64: 12, 1>}, {pipeline_mode = #tpu.pipeline_mode<synchronous>, transform_indices = @transform_3, window_bounds = array<i64: 12, 1>}, {pipeline_mode = #tpu.pipeline_mode<synchronous>, transform_indices = @transform_4, window_bounds = array<i64: 2, 12, 256>}]} {
    %0 = tpu.iota {dimensions = array<i32: 1>} : vector<1x256xi32>
    %c16_i32 = arith.constant 16 : i32
    %c0_i32 = arith.constant 0 : i32
    %1 = arith.cmpi eq, %c16_i32, %c0_i32 : i32
    %c1_i32 = arith.constant 1 : i32
    %2 = arith.select %1, %c1_i32, %c16_i32 : i32
    %3 = vector.broadcast %2 : i32 to vector<1x256xi32>
    %4 = arith.remsi %0, %3 : vector<1x256xi32>
    %c0_i32_0 = arith.constant 0 : i32
    %5 = vector.broadcast %c0_i32_0 : i32 to vector<1x256xi32>
    %6 = arith.cmpi ne, %4, %5 : vector<1x256xi32>
    %c0_i32_1 = arith.constant 0 : i32
    %7 = vector.broadcast %c0_i32_1 : i32 to vector<1x256xi32>
    %8 = arith.cmpi slt, %4, %7 : vector<1x256xi32>
    %c0_i32_2 = arith.constant 0 : i32
    %9 = arith.cmpi slt, %2, %c0_i32_2 : i32
    %10 = vector.broadcast %9 : i1 to vector<1x256xi1>
    %11 = vector.broadcast %10 : vector<1x256xi1> to vector<1x256xi1>
    %12 = arith.xori %8, %11 : vector<1x256xi1>
    %13 = arith.andi %12, %6 : vector<1x256xi1>
    %14 = vector.broadcast %2 : i32 to vector<1x256xi32>
    %15 = arith.addi %4, %14 : vector<1x256xi32>
    %16 = arith.select %13, %15, %4 : vector<1x256xi1>, vector<1x256xi32>
    %c1_i32_3 = arith.constant 1 : i32
    %17 = vector.broadcast %c1_i32_3 : i32 to vector<1x256xi32>
    %18 = arith.cmpi sge, %16, %17 : vector<1x256xi32>
    %c15_i32 = arith.constant 15 : i32
    %19 = vector.broadcast %c15_i32 : i32 to vector<1x256xi32>
    %20 = arith.cmpi slt, %16, %19 : vector<1x256xi32>
    %c0 = arith.constant 0 : index
    %c0_4 = arith.constant 0 : index
    %21 = vector.load %arg2[%c0, %c0_4] : memref<12x36xf32, #tpu.memory_space<vmem>>, vector<12x36xf32>
    %cst = arith.constant 0.000000e+00 : f32
    %22 = vector.broadcast %cst : f32 to vector<4x17xf32>
    %cst_5 = arith.constant 0.000000e+00 : f32
    %23 = vector.broadcast %cst_5 : f32 to vector<12x1xf32>
    %c0_6 = arith.constant 0 : index
    %c0_7 = arith.constant 0 : index
    %c0_8 = arith.constant 0 : index
    %24 = vector.load %arg1[%c0_6, %c0_7, %c0_8] : memref<2x4x256xf32, #tpu.memory_space<vmem>>, vector<1x4x256xf32>
    %25 = vector.shape_cast %24 : vector<1x4x256xf32> to vector<4x256xf32>
    %26 = tpu.concatenate %22, %25, %22 in 1 : vector<4x17xf32>, vector<4x256xf32>, vector<4x17xf32> -> vector<4x290xf32>
    %27 = vector.extract_strided_slice %26 {offsets = [0, 0], sizes = [4, 256], strides = [1, 1]} : vector<4x290xf32> to vector<4x256xf32>
    %cst_9 = arith.constant 0.000000e+00 : f32
    %28 = vector.shape_cast %18 : vector<1x256xi1> to vector<1x256xi1>
    %29 = vector.broadcast %28 : vector<1x256xi1> to vector<4x256xi1>
    %30 = vector.broadcast %cst_9 : f32 to vector<4x256xf32>
    %31 = arith.select %29, %27, %30 : vector<4x256xi1>, vector<4x256xf32>
    %32 = vector.extract_strided_slice %26 {offsets = [0, 1], sizes = [4, 256], strides = [1, 1]} : vector<4x290xf32> to vector<4x256xf32>
    %33 = vector.extract_strided_slice %26 {offsets = [0, 2], sizes = [4, 256], strides = [1, 1]} : vector<4x290xf32> to vector<4x256xf32>
    %cst_10 = arith.constant 0.000000e+00 : f32
    %34 = vector.shape_cast %20 : vector<1x256xi1> to vector<1x256xi1>
    %35 = vector.broadcast %34 : vector<1x256xi1> to vector<4x256xi1>
    %36 = vector.broadcast %cst_10 : f32 to vector<4x256xf32>
    %37 = arith.select %35, %33, %36 : vector<4x256xi1>, vector<4x256xf32>
    %38 = vector.extract_strided_slice %26 {offsets = [0, 16], sizes = [4, 256], strides = [1, 1]} : vector<4x290xf32> to vector<4x256xf32>
    %cst_11 = arith.constant 0.000000e+00 : f32
    %39 = vector.shape_cast %18 : vector<1x256xi1> to vector<1x256xi1>
    %40 = vector.broadcast %39 : vector<1x256xi1> to vector<4x256xi1>
    %41 = vector.broadcast %cst_11 : f32 to vector<4x256xf32>
    %42 = arith.select %40, %38, %41 : vector<4x256xi1>, vector<4x256xf32>
    %43 = vector.extract_strided_slice %26 {offsets = [0, 17], sizes = [4, 256], strides = [1, 1]} : vector<4x290xf32> to vector<4x256xf32>
    %44 = vector.extract_strided_slice %26 {offsets = [0, 18], sizes = [4, 256], strides = [1, 1]} : vector<4x290xf32> to vector<4x256xf32>
    %cst_12 = arith.constant 0.000000e+00 : f32
    %45 = vector.shape_cast %20 : vector<1x256xi1> to vector<1x256xi1>
    %46 = vector.broadcast %45 : vector<1x256xi1> to vector<4x256xi1>
    %47 = vector.broadcast %cst_12 : f32 to vector<4x256xf32>
    %48 = arith.select %46, %44, %47 : vector<4x256xi1>, vector<4x256xf32>
    %49 = vector.extract_strided_slice %26 {offsets = [0, 32], sizes = [4, 256], strides = [1, 1]} : vector<4x290xf32> to vector<4x256xf32>
    %cst_13 = arith.constant 0.000000e+00 : f32
    %50 = vector.shape_cast %18 : vector<1x256xi1> to vector<1x256xi1>
    %51 = vector.broadcast %50 : vector<1x256xi1> to vector<4x256xi1>
    %52 = vector.broadcast %cst_13 : f32 to vector<4x256xf32>
    %53 = arith.select %51, %49, %52 : vector<4x256xi1>, vector<4x256xf32>
    %54 = vector.extract_strided_slice %26 {offsets = [0, 33], sizes = [4, 256], strides = [1, 1]} : vector<4x290xf32> to vector<4x256xf32>
    %55 = vector.extract_strided_slice %26 {offsets = [0, 34], sizes = [4, 256], strides = [1, 1]} : vector<4x290xf32> to vector<4x256xf32>
    %cst_14 = arith.constant 0.000000e+00 : f32
    %56 = vector.shape_cast %20 : vector<1x256xi1> to vector<1x256xi1>
    %57 = vector.broadcast %56 : vector<1x256xi1> to vector<4x256xi1>
    %58 = vector.broadcast %cst_14 : f32 to vector<4x256xf32>
    %59 = arith.select %57, %55, %58 : vector<4x256xi1>, vector<4x256xf32>
    %60 = tpu.concatenate %31, %32, %37, %42, %43, %48, %53, %54, %59 in 0 : vector<4x256xf32>, vector<4x256xf32>, vector<4x256xf32>, vector<4x256xf32>, vector<4x256xf32>, vector<4x256xf32>, vector<4x256xf32>, vector<4x256xf32>, vector<4x256xf32> -> vector<36x256xf32>
    %cst_15 = arith.constant dense<0.000000e+00> : vector<12x256xf32>
    %61 = tpu.matmul %21, %60, %cst_15 {dimension_numbers = #tpu.dot_dimension_numbers<[1], [0], [0], [1], [0, 0, 1, 1], [], []>} : vector<12x36xf32>, vector<36x256xf32>, vector<12x256xf32> -> vector<12x256xf32>
    %c0_16 = arith.constant 0 : index
    %c0_17 = arith.constant 0 : index
    %c0_18 = arith.constant 0 : index
    %62 = vector.load %arg5[%c0_16, %c0_17, %c0_18] : memref<2x12x256xf32, #tpu.memory_space<vmem>>, vector<1x12x256xf32>
    %63 = vector.shape_cast %62 : vector<1x12x256xf32> to vector<12x256xf32>
    %64 = vector.shape_cast %61 : vector<12x256xf32> to vector<1x12x256xf32>
    tpu.vector_store %arg5[%c0_16, %c0_17, %c0_18], %64 {strides = array<i32>} : memref<2x12x256xf32, #tpu.memory_space<vmem>>, vector<1x12x256xf32>,
    %cst_19 = arith.constant dense<0.000000e+00> : vector<12xf32>
    %65 = vector.multi_reduction <add>, %61, %cst_19 [1] : vector<12x256xf32> to vector<12xf32>
    %66 = vector.shape_cast %65 : vector<12xf32> to vector<12x1xf32>
    %67 = arith.addf %23, %66 : vector<12x1xf32>
    %c1 = arith.constant 1 : index
    %c0_20 = arith.constant 0 : index
    %c0_21 = arith.constant 0 : index
    %68 = vector.load %arg1[%c1, %c0_20, %c0_21] : memref<2x4x256xf32, #tpu.memory_space<vmem>>, vector<1x4x256xf32>
    %69 = vector.shape_cast %68 : vector<1x4x256xf32> to vector<4x256xf32>
    %70 = tpu.concatenate %22, %69, %22 in 1 : vector<4x17xf32>, vector<4x256xf32>, vector<4x17xf32> -> vector<4x290xf32>
    %71 = vector.extract_strided_slice %70 {offsets = [0, 0], sizes = [4, 256], strides = [1, 1]} : vector<4x290xf32> to vector<4x256xf32>
    %cst_22 = arith.constant 0.000000e+00 : f32
    %72 = vector.shape_cast %18 : vector<1x256xi1> to vector<1x256xi1>
    %73 = vector.broadcast %72 : vector<1x256xi1> to vector<4x256xi1>
    %74 = vector.broadcast %cst_22 : f32 to vector<4x256xf32>
    %75 = arith.select %73, %71, %74 : vector<4x256xi1>, vector<4x256xf32>
    %76 = vector.extract_strided_slice %70 {offsets = [0, 1], sizes = [4, 256], strides = [1, 1]} : vector<4x290xf32> to vector<4x256xf32>
    %77 = vector.extract_strided_slice %70 {offsets = [0, 2], sizes = [4, 256], strides = [1, 1]} : vector<4x290xf32> to vector<4x256xf32>
    %cst_23 = arith.constant 0.000000e+00 : f32
    %78 = vector.shape_cast %20 : vector<1x256xi1> to vector<1x256xi1>
    %79 = vector.broadcast %78 : vector<1x256xi1> to vector<4x256xi1>
    %80 = vector.broadcast %cst_23 : f32 to vector<4x256xf32>
    %81 = arith.select %79, %77, %80 : vector<4x256xi1>, vector<4x256xf32>
    %82 = vector.extract_strided_slice %70 {offsets = [0, 16], sizes = [4, 256], strides = [1, 1]} : vector<4x290xf32> to vector<4x256xf32>
    %cst_24 = arith.constant 0.000000e+00 : f32
    %83 = vector.shape_cast %18 : vector<1x256xi1> to vector<1x256xi1>
    %84 = vector.broadcast %83 : vector<1x256xi1> to vector<4x256xi1>
    %85 = vector.broadcast %cst_24 : f32 to vector<4x256xf32>
    %86 = arith.select %84, %82, %85 : vector<4x256xi1>, vector<4x256xf32>
    %87 = vector.extract_strided_slice %70 {offsets = [0, 17], sizes = [4, 256], strides = [1, 1]} : vector<4x290xf32> to vector<4x256xf32>
    %88 = vector.extract_strided_slice %70 {offsets = [0, 18], sizes = [4, 256], strides = [1, 1]} : vector<4x290xf32> to vector<4x256xf32>
    %cst_25 = arith.constant 0.000000e+00 : f32
    %89 = vector.shape_cast %20 : vector<1x256xi1> to vector<1x256xi1>
    %90 = vector.broadcast %89 : vector<1x256xi1> to vector<4x256xi1>
    %91 = vector.broadcast %cst_25 : f32 to vector<4x256xf32>
    %92 = arith.select %90, %88, %91 : vector<4x256xi1>, vector<4x256xf32>
    %93 = vector.extract_strided_slice %70 {offsets = [0, 32], sizes = [4, 256], strides = [1, 1]} : vector<4x290xf32> to vector<4x256xf32>
    %cst_26 = arith.constant 0.000000e+00 : f32
    %94 = vector.shape_cast %18 : vector<1x256xi1> to vector<1x256xi1>
    %95 = vector.broadcast %94 : vector<1x256xi1> to vector<4x256xi1>
    %96 = vector.broadcast %cst_26 : f32 to vector<4x256xf32>
    %97 = arith.select %95, %93, %96 : vector<4x256xi1>, vector<4x256xf32>
    %98 = vector.extract_strided_slice %70 {offsets = [0, 33], sizes = [4, 256], strides = [1, 1]} : vector<4x290xf32> to vector<4x256xf32>
    %99 = vector.extract_strided_slice %70 {offsets = [0, 34], sizes = [4, 256], strides = [1, 1]} : vector<4x290xf32> to vector<4x256xf32>
    %cst_27 = arith.constant 0.000000e+00 : f32
    %100 = vector.shape_cast %20 : vector<1x256xi1> to vector<1x256xi1>
    %101 = vector.broadcast %100 : vector<1x256xi1> to vector<4x256xi1>
    %102 = vector.broadcast %cst_27 : f32 to vector<4x256xf32>
    %103 = arith.select %101, %99, %102 : vector<4x256xi1>, vector<4x256xf32>
    %104 = tpu.concatenate %75, %76, %81, %86, %87, %92, %97, %98, %103 in 0 : vector<4x256xf32>, vector<4x256xf32>, vector<4x256xf32>, vector<4x256xf32>, vector<4x256xf32>, vector<4x256xf32>, vector<4x256xf32>, vector<4x256xf32>, vector<4x256xf32> -> vector<36x256xf32>
    %cst_28 = arith.constant dense<0.000000e+00> : vector<12x256xf32>
    %105 = tpu.matmul %21, %104, %cst_28 {dimension_numbers = #tpu.dot_dimension_numbers<[1], [0], [0], [1], [0, 0, 1, 1], [], []>} : vector<12x36xf32>, vector<36x256xf32>, vector<12x256xf32> -> vector<12x256xf32>
    %c1_29 = arith.constant 1 : index
    %c0_30 = arith.constant 0 : index
    %c0_31 = arith.constant 0 : index
    %106 = vector.load %arg5[%c1_29, %c0_30, %c0_31] : memref<2x12x256xf32, #tpu.memory_space<vmem>>, vector<1x12x256xf32>
    %107 = vector.shape_cast %106 : vector<1x12x256xf32> to vector<12x256xf32>
    %108 = vector.shape_cast %105 : vector<12x256xf32> to vector<1x12x256xf32>
    tpu.vector_store %arg5[%c1_29, %c0_30, %c0_31], %108 {strides = array<i32>} : memref<2x12x256xf32, #tpu.memory_space<vmem>>, vector<1x12x256xf32>,
    %cst_32 = arith.constant dense<0.000000e+00> : vector<12xf32>
    %109 = vector.multi_reduction <add>, %105, %cst_32 [1] : vector<12x256xf32> to vector<12xf32>
    %110 = vector.shape_cast %109 : vector<12xf32> to vector<12x1xf32>
    %111 = arith.addf %67, %110 : vector<12x1xf32>
    %cst_33 = arith.constant 0.001953125 : f32
    %112 = vector.broadcast %cst_33 : f32 to vector<12x1xf32>
    %113 = arith.mulf %111, %112 : vector<12x1xf32>
    %cst_34 = arith.constant 0.000000e+00 : f32
    %114 = vector.broadcast %cst_34 : f32 to vector<12x1xf32>
    %c0_35 = arith.constant 0 : index
    %c0_36 = arith.constant 0 : index
    %c0_37 = arith.constant 0 : index
    %115 = vector.load %arg5[%c0_35, %c0_36, %c0_37] : memref<2x12x256xf32, #tpu.memory_space<vmem>>, vector<1x12x256xf32>
    %116 = vector.shape_cast %115 : vector<1x12x256xf32> to vector<12x256xf32>
    %117 = vector.broadcast %113 : vector<12x1xf32> to vector<12x256xf32>
    %118 = arith.subf %116, %117 : vector<12x256xf32>
    %119 = arith.mulf %118, %118 : vector<12x256xf32>
    %cst_38 = arith.constant dense<0.000000e+00> : vector<12xf32>
    %120 = vector.multi_reduction <add>, %119, %cst_38 [1] : vector<12x256xf32> to vector<12xf32>
    %121 = vector.shape_cast %120 : vector<12xf32> to vector<12x1xf32>
    %122 = arith.addf %114, %121 : vector<12x1xf32>
    %c1_39 = arith.constant 1 : index
    %c0_40 = arith.constant 0 : index
    %c0_41 = arith.constant 0 : index
    %123 = vector.load %arg5[%c1_39, %c0_40, %c0_41] : memref<2x12x256xf32, #tpu.memory_space<vmem>>, vector<1x12x256xf32>
    %124 = vector.shape_cast %123 : vector<1x12x256xf32> to vector<12x256xf32>
    %125 = vector.broadcast %113 : vector<12x1xf32> to vector<12x256xf32>
    %126 = arith.subf %124, %125 : vector<12x256xf32>
    %127 = arith.mulf %126, %126 : vector<12x256xf32>
    %cst_42 = arith.constant dense<0.000000e+00> : vector<12xf32>
    %128 = vector.multi_reduction <add>, %127, %cst_42 [1] : vector<12x256xf32> to vector<12xf32>
    %129 = vector.shape_cast %128 : vector<12xf32> to vector<12x1xf32>
    %130 = arith.addf %122, %129 : vector<12x1xf32>
    %cst_43 = arith.constant 0.001953125 : f32
    %131 = vector.broadcast %cst_43 : f32 to vector<12x1xf32>
    %132 = arith.mulf %130, %131 : vector<12x1xf32>
    %c0_44 = arith.constant 0 : index
    %c0_45 = arith.constant 0 : index
    %133 = vector.load %arg3[%c0_44, %c0_45] : memref<12x1xf32, #tpu.memory_space<vmem>>, vector<12x1xf32>
    %cst_46 = arith.constant 1.000000e-03 : f32
    %134 = vector.broadcast %cst_46 : f32 to vector<12x1xf32>
    %135 = arith.addf %132, %134 : vector<12x1xf32>
    %136 = math.rsqrt %135 : vector<12x1xf32>
    %137 = arith.mulf %133, %136 : vector<12x1xf32>
    %c0_47 = arith.constant 0 : index
    %c0_48 = arith.constant 0 : index
    %138 = vector.load %arg4[%c0_47, %c0_48] : memref<12x1xf32, #tpu.memory_space<vmem>>, vector<12x1xf32>
    %139 = arith.mulf %113, %137 : vector<12x1xf32>
    %140 = arith.subf %138, %139 : vector<12x1xf32>
    %c0_49 = arith.constant 0 : index
    %c0_50 = arith.constant 0 : index
    %c0_51 = arith.constant 0 : index
    %141 = vector.load %arg5[%c0_49, %c0_50, %c0_51] : memref<2x12x256xf32, #tpu.memory_space<vmem>>, vector<1x12x256xf32>
    %142 = vector.shape_cast %141 : vector<1x12x256xf32> to vector<12x256xf32>
    %143 = vector.broadcast %137 : vector<12x1xf32> to vector<12x256xf32>
    %144 = arith.mulf %142, %143 : vector<12x256xf32>
    %145 = vector.broadcast %140 : vector<12x1xf32> to vector<12x256xf32>
    %146 = arith.addf %144, %145 : vector<12x256xf32>
    %c0_52 = arith.constant 0 : index
    %c0_53 = arith.constant 0 : index
    %c0_54 = arith.constant 0 : index
    %147 = vector.load %arg5[%c0_52, %c0_53, %c0_54] : memref<2x12x256xf32, #tpu.memory_space<vmem>>, vector<1x12x256xf32>
    %148 = vector.shape_cast %147 : vector<1x12x256xf32> to vector<12x256xf32>
    %149 = vector.shape_cast %146 : vector<12x256xf32> to vector<1x12x256xf32>
    tpu.vector_store %arg5[%c0_52, %c0_53, %c0_54], %149 {strides = array<i32>} : memref<2x12x256xf32, #tpu.memory_space<vmem>>, vector<1x12x256xf32>,
    %c1_55 = arith.constant 1 : index
    %c0_56 = arith.constant 0 : index
    %c0_57 = arith.constant 0 : index
    %150 = vector.load %arg5[%c1_55, %c0_56, %c0_57] : memref<2x12x256xf32, #tpu.memory_space<vmem>>, vector<1x12x256xf32>
    %151 = vector.shape_cast %150 : vector<1x12x256xf32> to vector<12x256xf32>
    %152 = vector.broadcast %137 : vector<12x1xf32> to vector<12x256xf32>
    %153 = arith.mulf %151, %152 : vector<12x256xf32>
    %154 = vector.broadcast %140 : vector<12x1xf32> to vector<12x256xf32>
    %155 = arith.addf %153, %154 : vector<12x256xf32>
    %c1_58 = arith.constant 1 : index
    %c0_59 = arith.constant 0 : index
    %c0_60 = arith.constant 0 : index
    %156 = vector.load %arg5[%c1_58, %c0_59, %c0_60] : memref<2x12x256xf32, #tpu.memory_space<vmem>>, vector<1x12x256xf32>
    %157 = vector.shape_cast %156 : vector<1x12x256xf32> to vector<12x256xf32>
    %158 = vector.shape_cast %155 : vector<12x256xf32> to vector<1x12x256xf32>
    tpu.vector_store %arg5[%c1_58, %c0_59, %c0_60], %158 {strides = array<i32>} : memref<2x12x256xf32, #tpu.memory_space<vmem>>, vector<1x12x256xf32>,
    return
  }
  func.func @transform_0(%arg0: i32) -> (i32, i32, i32) {
    %c0_i32 = arith.constant 0 : i32
    %c0_i32_0 = arith.constant 0 : i32
    %c0_i32_1 = arith.constant 0 : i32
    %c0_i32_2 = arith.constant 0 : i32
    return %c0_i32, %c0_i32_0, %c0_i32_1 : i32, i32, i32
  }
  func.func @transform_1(%arg0: i32) -> (i32, i32) {
    %c0_i32 = arith.constant 0 : i32
    %c0_i32_0 = arith.constant 0 : i32
    %c0_i32_1 = arith.constant 0 : i32
    return %c0_i32, %c0_i32_0 : i32, i32
  }
  func.func @transform_2(%arg0: i32) -> (i32, i32) {
    %c0_i32 = arith.constant 0 : i32
    %c0_i32_0 = arith.constant 0 : i32
    %c0_i32_1 = arith.constant 0 : i32
    return %c0_i32, %c0_i32_0 : i32, i32
  }
  func.func @transform_3(%arg0: i32) -> (i32, i32) {
    %c0_i32 = arith.constant 0 : i32
    %c0_i32_0 = arith.constant 0 : i32
    %c0_i32_1 = arith.constant 0 : i32
    return %c0_i32, %c0_i32_0 : i32, i32
  }
  func.func @transform_4(%arg0: i32) -> (i32, i32, i32) {
    %c0_i32 = arith.constant 0 : i32
    %c0_i32_0 = arith.constant 0 : i32
    %c0_i32_1 = arith.constant 0 : i32
    %c0_i32_2 = arith.constant 0 : i32
    return %c0_i32, %c0_i32_0, %c0_i32_1 : i32, i32, i32
  }
}

</mosaic_0001>

<bundles_post_ra>
// kernel: tpu_custom_call.1
= control target key start
LH: loop header
LB: loop body
LE: loop exit
PB: predicated region body
PF: predicated region fallthrough
CT: control target
= control target key end

     0   :  { %s810_s19 = smov 17   ;;  %vm57_vm0 = vcmask 138240   ;;  %s812_s20 = smov 112   ;;  %v819_v26 = vmov 0.0   ;;  %v17_v29 = vlaneseq  ;;  %vm95_vm3 = vcmask 916480   ;;  %s1182_s0 = inlined_call_operand.vmem [shape: f32[2,4,256], index: 0, kind: input, shape index: {}]   ;;  %s1183_s1 = inlined_call_operand.vmem [shape: f32[12,36], index: 1, kind: input, shape index: {}]   ;;  %s1184_s4 = inlined_call_operand.vmem [shape: f32[2,12,256], index: 4, kind: output, shape index: {}]   ;;  %s1185_s2 = inlined_call_operand.vmem [shape: f32[12,1], index: 2, kind: input, shape index: {}]   ;;  %s1186_s3 = inlined_call_operand.vmem [shape: f32[12,1], index: 3, kind: input, shape index: {}]  }
   0x1   :  { %v649_v0 = vld [vmem:[%s1182_s0 + $0x8] sm:$0xff]  ;;  %v50_v1 = vld [vmem:[%s1182_s0] sm:$0xff]  ;;  %s811_s0 = smov 126   ;;  %s813_s21 = smov 110   ;;  %275 = vmatprep.mubr.f32.mxu0 %v819_v26  ;;  %503 = vmatprep.mubr.f32.mxu1 %v819_v26  ;;  %vm108_vm6 = vcmask 900096   ;;  %vm82_vm7 = vcmask 1031168  }
   0x2   :  { %306 = vrot.lane.b32.xlu1 %v649_v0, %s810_s19  ;;  %v305_v2 = vcombine.high %v649_v0, %v649_v0  ;;  %53 = vrot.lane.b32.xlu0 %v50_v1, %s810_s19  ;;  %v52_v3 = vcombine.high %v50_v1, %v50_v1  ;;  %s814_s22 = smov 96   ;;  %s815_s23 = smov 111   ;;  %v18_v32 = vand.u32 127, %v17_v29  ;;  %vm189_vm8 = vcmask 1043456   ;;  %v49_v52 = vld [vmem:[%s1183_s1 + $0x8] sm:$0xf] }
   0x3   :  { %s816_s24 = smov 127   ;;  %s817_s25 = smov 95   ;;  %vm150_vm9 = vcmask 1039360   ;;  %vm121_vm10 = vcmask 785408   ;;  %vm167_vm11 = vcmask 908288   ;;  %vm184_vm12 = vcmask 777216  }
   0x4   :  { %s818_s26 = smov 94   ;;  %v19_v35 = vadd.s32 128, %v18_v32  ;;  %v24_v36 = vand.u32 15, %v18_v32  ;;  %vm134_vm13 = vcmask 769024   ;;  %vm198_vm14 = vcmask 293888  }
   0x6   :  { %308 = vrot.lane.b32.xlu1 %v305_v2, %s810_s19  ;;  %55 = vrot.lane.b32.xlu0 %v52_v3, %s810_s19  ;;  %v31_v39 = vand.u32 15, %v19_v35  ;;  %vm888_vm1 = vcmp.ge.s32.totalorder %v24_v36, 1  ;;  %vm899_vm4 = vcmp.lt.s32.totalorder %v24_v36, 15 }
   0x8   :  { %vm892_vm2 = vcmp.ge.s32.totalorder %v31_v39, 1  ;;  %vm906_vm5 = vcmp.lt.s32.totalorder %v31_v39, 15 }
  0x74   :  { %v307_v4 = vpop.permute.xlu1 %306  ;;  %v54_v5 = vpop.permute.xlu0 %53 }
  0x75   :  { %v853_v6 = vsel %vm57_vm0, 0.0, %v307_v4  ;;  %v856_v7 = vsel %vm57_vm0, 0.0, %v54_v5 }
  0x76   :  { %v702_v8 = vpack.i.bf16 %v853_v6, %v856_v7  ;;  %v141_v17 = vrot.slane %v856_v7, 4  ;;  %v380_v18 = vrot.slane %v853_v6, 4  ;;  %v68_v46 = vsel %vm888_vm1, %v856_v7, 0.0 }
  0x77   :  { %v316_v50 = vsel %vm888_vm1, %v853_v6, 0.0 }
  0x78   :  { %703 = vrot.lane.b32.xlu1 %v702_v8, %s811_s0  ;;  %698 = vrot.lane.b32.xlu0 %v702_v8, %s812_s20  ;;  %v56_v9 = vpop.permute.xlu0 %55  ;;  %v309_v12 = vpop.permute.xlu1 %308  ;;  %v747_v19 = vpack.i.bf16 %v380_v18, %v141_v17 }
  0x79   :  { %v861_v10 = vsel %vm57_vm0, %v54_v5, %v56_v9  ;;  %v63_v11 = vsel %vm57_vm0, %v56_v9, 0.0  ;;  %v866_v14 = vsel %vm57_vm0, %v307_v4, %v309_v12  ;;  %v315_v15 = vsel %vm57_vm0, %v309_v12, 0.0 }
  0x7a   :  { %v722_v13 = vpack.i.bf16 %v63_v11, %v861_v10  ;;  %v727_v16 = vpack.i.bf16 %v315_v15, %v866_v14  ;;  %v142_v20 = vrot.slane %v861_v10, 4  ;;  %v143_v21 = vrot.slane %v63_v11, 4 }
  0x7b   :  { %v381_v23 = vrot.slane %v866_v14, 4  ;;  %v382_v24 = vrot.slane %v315_v15, 4  ;;  %v69_v53 = vsel %vm892_vm2, %v861_v10, 0.0  ;;  %v317_v59 = vsel %vm892_vm2, %v866_v14, 0.0 }
  0x7c   :  { %708 = vrot.lane.b32.xlu1 %v702_v8, %s813_s21  ;;  %713 = vrot.lane.b32.xlu0 %v702_v8, %s814_s22  ;;  %v782_v22 = vpack.i.bf16 %v143_v21, %v142_v20 }
  0x7d   :  { %v787_v25 = vpack.i.bf16 %v382_v24, %v381_v23 }
  0x80   :  { %718 = vrot.lane.b32.xlu1 %v702_v8, %s815_s23  ;;  %723 = vrot.lane.b32.xlu0 %v722_v13, %s812_s20 }
  0x84   :  { %728 = vrot.lane.b32.xlu1 %v727_v16, %s812_s20  ;;  %738 = vrot.lane.b32.xlu0 %v727_v16, %s811_s0 }
  0x88   :  { %733 = vrot.lane.b32.xlu1 %v722_v13, %s811_s0  ;;  %743 = vrot.lane.b32.xlu0 %v722_v13, %s813_s21 }
  0x8c   :  { %748 = vrot.lane.b32.xlu1 %v747_v19, %s816_s24  ;;  %753 = vrot.lane.b32.xlu0 %v727_v16, %s813_s21 }
  0x90   :  { %763 = vrot.lane.b32.xlu1 %v727_v16, %s814_s22  ;;  %758 = vrot.lane.b32.xlu0 %v722_v13, %s814_s22 }
  0x94   :  { %768 = vrot.lane.b32.xlu1 %v722_v13, %s815_s23  ;;  %778 = vrot.lane.b32.xlu0 %v747_v19, %s817_s25 }
  0x98   :  { %773 = vrot.lane.b32.xlu1 %v727_v16, %s815_s23  ;;  %783 = vrot.lane.b32.xlu0 %v782_v22, %s816_s24 }
  0x9c   :  { %788 = vrot.lane.b32.xlu1 %v787_v25, %s816_s24  ;;  %132 = vrot.lane.b32.xlu0 %v63_v11, %s818_s26 }
  0xa0   :  { %130 = vrot.lane.b32.xlu1 %v861_v10, %s818_s26  ;;  %793 = vrot.lane.b32.xlu0 %v782_v22, %s817_s25 }
  0xa4   :  { %370 = vrot.lane.b32.xlu1 %v866_v14, %s818_s26  ;;  %798 = vrot.lane.b32.xlu0 %v787_v25, %s817_s25 }
  0xa8   :  { %128 = vrot.lane.b32.xlu1 %v856_v7, %s818_s26  ;;  %372 = vrot.lane.b32.xlu0 %v315_v15, %s818_s26 }
  0xac   :  { %368 = vrot.lane.b32.xlu0 %v853_v6, %s818_s26 }
  0xea   :  { %v880_v27 = vpop.permute.xlu1 %703  ;;  %v699_v28 = vpop.permute.xlu0 %698 }
  0xeb   :  { %v700_v51 = vunpack.i.l.bf16 %v699_v28  ;;  %v706_v54 = vunpack.i.h.bf16 %v880_v27  ;;  %v701_v55 = vunpack.i.h.bf16 %v699_v28  ;;  %v705_v4 = vunpack.i.l.bf16 %v880_v27 }
  0xee   :  { %v882_v30 = vpop.permute.xlu1 %708  ;;  %v884_v31 = vpop.permute.xlu0 %713 }
  0xef   :  { %v710_v60 = vunpack.i.l.bf16 %v882_v30  ;;  %v711_v5 = vunpack.i.h.bf16 %v882_v30  ;;  %v716_v11 = vunpack.i.h.bf16 %v884_v31  ;;  %v715_v12 = vunpack.i.l.bf16 %v884_v31 }
  0xf2   :  { %v886_v33 = vpop.permute.xlu1 %718  ;;  %v724_v34 = vpop.permute.xlu0 %723 }
  0xf3   :  { %v726_v44 = vunpack.i.h.bf16 %v724_v34  ;;  %v725_v45 = vunpack.i.l.bf16 %v724_v34  ;;  %v721_v27 = vunpack.i.h.bf16 %v886_v33  ;;  %v720_v32 = vunpack.i.l.bf16 %v886_v33 }
  0xf5   :  { %v96_v61 = vsel %vm95_vm3, %v700_v51, %v725_v45  ;;  %v97_v62 = vsel %vm95_vm3, %v725_v45, %v726_v44 }
  0xf6   :  { %v729_v37 = vpop.permute.xlu1 %728  ;;  %v739_v38 = vpop.permute.xlu0 %738  ;;  %v101_v17 = vsel %vm892_vm2, %v97_v62, 0.0  ;;  %v100_v19 = vsel %vm888_vm1, %v96_v61, 0.0 }
  0xf7   :  { %v731_v47 = vunpack.i.h.bf16 %v729_v37  ;;  %v730_v48 = vunpack.i.l.bf16 %v729_v37  ;;  %v741_v8 = vunpack.i.h.bf16 %v739_v38  ;;  %v740_v9 = vunpack.i.l.bf16 %v739_v38 }
  0xf8   :  { %v158_v37 = vrot.slane %v101_v17, 4 }
  0xf9   :  { %v338_v0 = vsel %vm95_vm3, %v701_v55, %v730_v48  ;;  %v339_v1 = vsel %vm95_vm3, %v730_v48, %v731_v47  ;;  %v327_v29 = vsel %vm82_vm7, %v740_v9, %v741_v8  ;;  %v326_v30 = vsel %vm82_vm7, %v706_v54, %v740_v9 }
  0xfa   :  { %v734_v41 = vpop.permute.xlu1 %733  ;;  %v744_v42 = vpop.permute.xlu0 %743  ;;  %v343_v20 = vsel %vm892_vm2, %v339_v1, 0.0  ;;  %v342_v21 = vsel %vm888_vm1, %v338_v0, 0.0  ;;  %v331_v48 = vsel %vm906_vm5, %v327_v29, 0.0  ;;  %v330_v51 = vsel %vm899_vm4, %v326_v30, 0.0 }
  0xfb   :  { %v745_v56 = vunpack.i.l.bf16 %v744_v42  ;;  %v746_v63 = vunpack.i.h.bf16 %v744_v42  ;;  %v736_v2 = vunpack.i.h.bf16 %v734_v41  ;;  %v735_v3 = vunpack.i.l.bf16 %v734_v41 }
  0xfc   :  { %v396_v38 = vrot.slane %v343_v20, 4  ;;  %v157_v42 = vrot.slane %v100_v19, 4  ;;  %v395_v44 = vrot.slane %v342_v21, 4 }
  0xfd   :  { %v109_v13 = vsel %vm108_vm6, %v710_v60, %v745_v56  ;;  %v110_v18 = vsel %vm108_vm6, %v745_v56, %v746_v63  ;;  %v84_v24 = vsel %vm82_vm7, %v735_v3, %v736_v2  ;;  %v83_v25 = vsel %vm82_vm7, %v705_v4, %v735_v3 }
  0xfe   :  { %v914_v57 = vpop.permute.xlu1 %748  ;;  %v754_v58 = vpop.permute.xlu0 %753  ;;  %v113_v28 = vsel %vm899_vm4, %v109_v13, 0.0  ;;  %v114_v34 = vsel %vm906_vm5, %v110_v18, 0.0  ;;  %v88_v39 = vsel %vm906_vm5, %v84_v24, 0.0  ;;  %v87_v41 = vsel %vm899_vm4, %v83_v25, 0.0 }
  0xff   :  { %v756_v22 = vunpack.i.h.bf16 %v754_v58  ;;  %v755_v23 = vunpack.i.l.bf16 %v754_v58  ;;  %v958_v45 = vrot.slane %v113_v28, 4  ;;  %v175_v54 = vrot.slane %v114_v34, 4 }
 0x100   :  { %v751_v55 = vunpack.i.h.bf16 %v914_v57  ;;  %v750_v56 = vunpack.i.l.bf16 %v914_v57  ;;  %v193_v63 = vsel %vm189_vm8, %v88_v39, %v158_v37  ;;  %v192_v0 = vsel %vm189_vm8, %v87_v41, %v157_v42 }
 0x101   :  { %v351_v47 = vsel %vm108_vm6, %v755_v23, %v756_v22  ;;  %v968_v58 = vsel %vm108_vm6, %v711_v5, %v755_v23  ;;  %v428_v1 = vsel %vm189_vm8, %v331_v48, %v396_v38  ;;  %v427_v57 = vsel %vm189_vm8, %v330_v51, %v395_v44 }
 0x102   :  { %v929_v15 = vpop.permute.xlu1 %763  ;;  %v931_v16 = vpop.permute.xlu0 %758  ;;  %v355_v2 = vsel %vm906_vm5, %v351_v47, 0.0  ;;  %v354_v5 = vsel %vm899_vm4, %v968_v58, 0.0 }
 0x103   :  { %v765_v60 = vunpack.i.l.bf16 %v929_v15  ;;  %v766_v8 = vunpack.i.h.bf16 %v929_v15  ;;  %v761_v9 = vunpack.i.h.bf16 %v931_v16  ;;  %v760_v13 = vunpack.i.l.bf16 %v931_v16 }
 0x104   :  { %v412_v21 = vrot.slane %v355_v2, 4  ;;  %v411_v2 = vrot.slane %v354_v5, 4 }
 0x105   :  { %v986_v22 = vsel %vm121_vm10, %v716_v11, %v765_v60  ;;  %v363_v11 = vsel %vm121_vm10, %v765_v60, %v766_v8  ;;  %v122_v34 = vsel %vm121_vm10, %v715_v12, %v760_v13  ;;  %v123_v10 = vsel %vm121_vm10, %v760_v13, %v761_v9 }
 0x106   :  { %v769_v35 = vpop.permute.xlu1 %768  ;;  %v952_v36 = vpop.permute.xlu0 %778  ;;  %v126_v14 = vsel %vm888_vm1, %v122_v34, 0.0  ;;  %v366_v8 = vsel %vm888_vm1, %v986_v22, 0.0 }
 0x107   :  { %v771_v17 = vunpack.i.h.bf16 %v769_v35  ;;  %v770_v18 = vunpack.i.l.bf16 %v769_v35  ;;  %v780_v44 = vunpack.i.l.bf16 %v952_v36 }
 0x109   :  { %v169_v35 = vsel %vm167_vm11, %v770_v18, %v771_v17  ;;  %v168_v38 = vsel %vm167_vm11, %v720_v32, %v770_v18 }
 0x10a   :  { %v774_v61 = vpop.permute.xlu1 %773  ;;  %v784_v62 = vpop.permute.xlu0 %783 }
 0x10b   :  { %v786_v3 = vunpack.i.h.bf16 %v784_v62  ;;  %v785_v4 = vunpack.i.l.bf16 %v784_v62  ;;  %v775_v37 = vunpack.i.l.bf16 %v774_v61  ;;  %v776_v39 = vunpack.i.h.bf16 %v774_v61 }
 0x10d   :  { %v152_v19 = vsel %vm150_vm9, %v785_v4, %v786_v3  ;;  %v151_v20 = vsel %vm150_vm9, %v750_v56, %v785_v4  ;;  %v195_v56 = vsel %vm189_vm8, %v169_v35, %v175_v54  ;;  %v405_v6 = vsel %vm167_vm11, %v721_v27, %v775_v37 }
 0x10e   :  { %v789_v23 = vpop.permute.xlu1 %788  ;;  %v133_v24 = vpop.permute.xlu0 %132  ;;  %v191_v15 = vsel %vm189_vm8, %v69_v53, %v152_v19  ;;  %v190_v16 = vsel %vm189_vm8, %v68_v46, %v151_v20  ;;  %v781_v53 = vunpack.i.h.bf16 %v952_v36  ;;  %v194_v36 = vsel %vm189_vm8, %v168_v38, %v958_v45 }
 0x10f   :  { %v791_v25 = vunpack.i.h.bf16 %v789_v23  ;;  %v790_v28 = vunpack.i.l.bf16 %v789_v23  ;;  %v670_v29 = vpack.c.bf16 %v193_v63, %v191_v15  ;;  %v672_v30 = vpack.c.bf16 %v192_v0, %v190_v16  ;;  %v48_v23 = vld [vmem:[%s1183_s1] sm:$0xff] }
 0x110   :  { %v406_v58 = vsel %vm167_vm11, %v775_v37, %v776_v39  ;;  %v367_v3 = vsel %vm892_vm2, %v363_v11, 0.0  ;;  %v429_v5 = vsel %vm189_vm8, %v405_v6, %v411_v2 }
 0x111   :  { %671 = vmatprep.subr.bf16.mxu0 %v670_v29  ;;  %v390_v7 = vsel %vm150_vm9, %v790_v28, %v791_v25  ;;  %v389_v46 = vsel %vm150_vm9, %v751_v55, %v790_v28  ;;  %v127_v55 = vsel %vm892_vm2, %v123_v10, 0.0 }
 0x112   :  { %v131_v41 = vpop.permute.xlu1 %130  ;;  %v794_v42 = vpop.permute.xlu0 %793  ;;  %673 = vmatpush1.bf16.msra.mxu0 %v672_v30  ;;  %v426_v31 = vsel %vm189_vm8, %v317_v59, %v390_v7  ;;  %v425_v12 = vsel %vm189_vm8, %v316_v50, %v389_v46 }
 0x113   :  { %v796_v47 = vunpack.i.h.bf16 %v794_v42  ;;  %v795_v32 = vunpack.i.l.bf16 %v794_v42  ;;  %v678_v48 = vpack.c.bf16 %v428_v1, %v426_v31  ;;  %v680_v51 = vpack.c.bf16 %v427_v57, %v425_v12 }
 0x114   :  { %v136_v60 = vsel %vm134_vm13, %v131_v41, %v133_v24  ;;  %v430_v57 = vsel %vm189_vm8, %v406_v58, %v412_v21 }
 0x115   :  { %v185_v50 = vsel %vm184_vm12, %v780_v44, %v795_v32  ;;  %v186_v59 = vsel %vm184_vm12, %v795_v32, %v796_v47  ;;  %679 = vmatprep.subr.bf16.mxu1 %v678_v48  ;;  %v140_v9 = vsel %vm906_vm5, %v136_v60, 0.0 }
 0x116   :  { %v371_v54 = vpop.permute.xlu1 %370  ;;  %v799_v61 = vpop.permute.xlu0 %798  ;;  %681 = vmatpush1.bf16.msra.mxu1 %v680_v51  ;;  %v197_v62 = vsel %vm189_vm8, %v127_v55, %v186_v59  ;;  %v196_v33 = vsel %vm189_vm8, %v126_v14, %v185_v50 }
 0x117   :  { %v801_v27 = vunpack.i.h.bf16 %v799_v61  ;;  %v800_v63 = vunpack.i.l.bf16 %v799_v61  ;;  %v674_v0 = vpack.c.bf16 %v197_v62, %v195_v56  ;;  %v676_v1 = vpack.c.bf16 %v196_v33, %v194_v36 }
 0x119   :  { %v421_v45 = vsel %vm184_vm12, %v781_v53, %v800_v63  ;;  %v422_v4 = vsel %vm184_vm12, %v800_v63, %v801_v27  ;;  %675 = vmatprep.subr.bf16.mxu0 %v674_v0 }
 0x11a   :  { %v129_v13 = vpop.permute.xlu1 %128  ;;  %v373_v17 = vpop.permute.xlu0 %372  ;;  %677 = vmatpush1.bf16.msra.mxu0 %v676_v1  ;;  %v432_v43 = vsel %vm189_vm8, %v367_v3, %v422_v4  ;;  %v431_v18 = vsel %vm189_vm8, %v366_v8, %v421_v45 }
 0x11b   :  { %v135_v19 = vsel %vm134_vm13, %v129_v13, %v131_v41  ;;  %v375_v20 = vsel %vm134_vm13, %v371_v54, %v373_v17  ;;  %645 = vmatprep.subr.msk.mxu0 %vm189_vm8, %v140_v9  ;;  %v682_v40 = vpack.c.bf16 %v432_v43, %v430_v57  ;;  %v684_v21 = vpack.c.bf16 %v431_v18, %v429_v5 }
 0x11c   :  { %v139_v22 = vsel %vm899_vm4, %v135_v19, 0.0  ;;  %v379_v24 = vsel %vm906_vm5, %v375_v20, 0.0  ;;  %v820_v18 = vmov 0  }
 0x11d   :  { %683 = vmatprep.subr.bf16.mxu1 %v682_v40  ;;  %802 = vset.pattern.permute.xlu0 %v820_v18 }
 0x11e   :  { %v369_v15 = vpop.permute.xlu0 %368  ;;  %646 = vmatpush1.msk.msra.mxu0 %vm189_vm8, %v139_v22  ;;  %685 = vmatpush1.bf16.msra.mxu1 %v684_v21 }
 0x11f   :  { %v374_v16 = vsel %vm134_vm13, %v369_v15, %v371_v54  ;;  %647 = vmatmul.mubr.msk.f32.vlgmr.msra.gmra.mrb[0].mxu0 %vm198_vm14, %v48_v23  ;;  %650 = vmatprep.subr.msk.mxu1 %vm189_vm8, %v379_v24 }
 0x120   :  { %v378_v25 = vsel %vm899_vm4, %v374_v16, 0.0  ;;  %281 = vmatprep.mubr.f32.mxu0 %v819_v26  ;;  %803 = vset.pattern.permute.xlu1 %v820_v18 }
 0x122   :  { %651 = vmatpush1.msk.msra.mxu1 %vm189_vm8, %v378_v25 }
 0x123   :  { %648 = vmatmul.mubr.msk.f32.gmra.mrb[2].mxu0 %vm198_vm14, %v49_v52  ;;  %652 = vmatmul.mubr.msk.f32.vlgmr.msra.gmra.mrb[0].mxu1 %vm198_vm14, %v48_v23 }
 0x124   :  { %509 = vmatprep.mubr.f32.mxu1 %v819_v26 }
 0x127   :  { %653 = vmatmul.mubr.msk.f32.gmra.mrb[2].mxu1 %vm198_vm14, %v49_v52  ;;  %v579_v52 = vld [vmem:[%s1185_s2] sm:$0xff] }
 0x1f2   :  { %v1073_v28 = vpop.f32.mrb[0].mxu0 }
 0x1f3   :  { %v1075_v49 = vpop.f32.mrb[1].mxu0 }
 0x1f4   :  { %v292_v29 = vadd.f32 %v1075_v49, %v1073_v28 }
 0x1f6   :  { %v283_v30 = vpop.f32.mrb[2].mxu0  ;;  %v1079_v11 = vpop.f32.mrb[0].mxu1 }
 0x1f7   :  { %290 = vst [vmem:[%s1184_s4 + $0x10] sm:$0xf] %v283_v30  ;;  %v295_v34 = vsel %vm189_vm8, %v283_v30, 0.0  ;;  %v285_v10 = vpop.f32.mrb[3].mxu0  ;;  %v1085_v26 = vpop.f32.mrb[1].mxu1 }
 0x1f8   :  { %291 = vst [vmem:[%s1184_s4 + $0x18] sm:$0xf] %v285_v10  ;;  %v296_v53 = vsel %vm189_vm8, %v285_v10, 0.0  ;;  %v521_v35 = vadd.f32 %v1085_v26, %v1079_v11  ;;  %v587_v10 = vld [vmem:[%s1186_s3] sm:$0xff] }
 0x1f9   :  { %v297_v37 = vadd.f32 %v296_v53, %v295_v34  ;;  %v580_v53 = vld [vmem:[%s1185_s2 + $0x8] sm:$0xf] }
 0x1fa   :  { %v511_v7 = vpop.f32.mrb[2].mxu1 }
 0x1fb   :  { %656 = vst [vmem:[%s1184_s4 + $0x30] sm:$0xf] %v511_v7  ;;  %v524_v46 = vsel %vm189_vm8, %v511_v7, 0.0  ;;  %v513_v38 = vpop.f32.mrb[3].mxu1  ;;  %298 = vadd.xlane.f32.xlu1 %v297_v37 }
 0x1fc   :  { %657 = vst [vmem:[%s1184_s4 + $0x38] sm:$0xf] %v513_v38  ;;  %v525_v39 = vsel %vm189_vm8, %v513_v38, 0.0  ;;  %v588_v38 = vld [vmem:[%s1186_s3 + $0x8] sm:$0xf] }
 0x1fd   :  { %v526_v41 = vadd.f32 %v525_v39, %v524_v46 }
 0x1fe   :  { %v1106_v48 = vld [vmem:[%s1184_s4 + $0x10] sm:$0xf] }
 0x1ff   :  { %527 = vadd.xlane.f32.xlu0 %v526_v41  ;;  %522 = vadd.xlane.f32.xlu1 %v521_v35  ;;  %v1111_v51 = vld [vmem:[%s1184_s4 + $0x18] sm:$0xf] }
 0x202   :  { %v660_v55 = vld [vmem:[%s1184_s4 + $0x30] sm:$0xf] }
 0x203   :  { %293 = vadd.xlane.f32.xlu0 %v292_v29  ;;  %v661_v50 = vld [vmem:[%s1184_s4 + $0x38] sm:$0xf] }
 0x288   :  { %v299_v42 = vpop.xlane.xlu1 %298 }
 0x28c   :  { %v528_v31 = vpop.xlane.xlu0 %527  ;;  %v523_v47 = vpop.xlane.xlu1 %522 }
 0x28d   :  { %v530_v12 = vadd.f32 %v528_v31, %v299_v42 }
 0x28f   :  { %v1101_v44 = vmul.f32 0.001953125, %v530_v12 }
 0x290   :  { %v294_v32 = vpop.xlane.xlu0 %293 }
 0x291   :  { %v529_v56 = vadd.f32 %v523_v47, %v294_v32  ;;  %v539_v14 = vsub.f32 %v1106_v48, %v1101_v44  ;;  %v540_v6 = vsub.f32 %v1111_v51, %v1101_v44  ;;  %v561_v59 = vsub.f32 %v660_v55, %v1101_v44 }
 0x292   :  { %v562_v36 = vsub.f32 %v661_v50, %v1101_v44 }
 0x293   :  { %v531_v58 = vmul.f32 0.001953125, %v529_v56  ;;  %v543_v60 = vmul.f32 %v539_v14, %v539_v14  ;;  %v544_v54 = vmul.f32 %v540_v6, %v540_v6  ;;  %v565_v61 = vmul.f32 %v561_v59, %v561_v59 }
 0x294   :  { %v566_v62 = vmul.f32 %v562_v36, %v562_v36 }
 0x295   :  { %v548_v33 = vsel %vm189_vm8, %v543_v60, 0.0  ;;  %v549_v27 = vsel %vm189_vm8, %v544_v54, 0.0  ;;  %v537_v63 = vsub.f32 %v1073_v28, %v531_v58  ;;  %v538_v0 = vsub.f32 %v1075_v49, %v531_v58 }
 0x296   :  { %v550_v1 = vadd.f32 %v549_v27, %v548_v33  ;;  %v570_v2 = vsel %vm189_vm8, %v565_v61, 0.0  ;;  %v559_v3 = vsub.f32 %v1079_v11, %v531_v58  ;;  %v571_v57 = vsel %vm189_vm8, %v566_v62, 0.0 }
 0x297   :  { %v541_v45 = vmul.f32 %v537_v63, %v537_v63  ;;  %v542_v4 = vmul.f32 %v538_v0, %v538_v0  ;;  %v560_v8 = vsub.f32 %v1085_v26, %v531_v58  ;;  %v572_v43 = vadd.f32 %v571_v57, %v570_v2 }
 0x298   :  { %551 = vadd.xlane.f32.xlu1 %v550_v1  ;;  %v563_v9 = vmul.f32 %v559_v3, %v559_v3 }
 0x299   :  { %v545_v13 = vadd.f32 %v542_v4, %v541_v45  ;;  %v564_v17 = vmul.f32 %v560_v8, %v560_v8 }
 0x29b   :  { %546 = vadd.xlane.f32.xlu0 %v545_v13  ;;  %v567_v5 = vadd.f32 %v564_v17, %v563_v9 }
 0x29c   :  { %573 = vadd.xlane.f32.xlu1 %v572_v43 }
 0x29f   :  { %568 = vadd.xlane.f32.xlu0 %v567_v5 }
 0x325   :  { %v552_v19 = vpop.xlane.xlu1 %551 }
 0x328   :  { %v547_v20 = vpop.xlane.xlu0 %546 }
 0x329   :  { %v574_v40 = vpop.xlane.xlu1 %573 }
 0x32a   :  { %v576_v21 = vadd.f32 %v574_v40, %v552_v19 }
 0x32c   :  { %v569_v22 = vpop.xlane.xlu0 %568  ;;  %v578_v23 = vmul.f32 0.001953125, %v576_v21 }
 0x32d   :  { %v575_v24 = vadd.f32 %v569_v22, %v547_v20 }
 0x32e   :  { %v582_v16 = vadd.f32 0.001, %v578_v23 }
 0x32f   :  { %v577_v15 = vmul.f32 0.001953125, %v575_v24 }
 0x331   :  { %v581_v25 = vadd.f32 0.001, %v577_v15 }
 0x333   :  { %806 = vrsqrt.f32 %v581_v25 }
 0x334   :  { %808 = vrsqrt.f32 %v582_v16 }
 0x33d   :  { %v807_v29 = vpop.eup %806 }
 0x33e   :  { %v585_v30 = vmul.f32 %v807_v29, %v579_v52  ;;  %v809_v34 = vpop.eup %808 }
 0x33f   :  { %v586_v7 = vmul.f32 %v809_v34, %v580_v53 }
 0x340   :  { %595 = vperm.xlu0 %802, %v585_v30   ;;  %v589_v35 = vmul.f32 %v585_v30, %v531_v58 }
 0x341   :  { %v590_v46 = vmul.f32 %v586_v7, %v1101_v44 }
 0x342   :  { %v591_v37 = vsub.f32 %v587_v10, %v589_v35 }
 0x343   :  { %v592_v39 = vsub.f32 %v588_v38, %v590_v46 }
 0x344   :  { %609 = vperm.xlu1 %803, %v591_v37  }
 0x348   :  { %600 = vperm.xlu1 %803, %v586_v7  }
 0x34c   :  { %614 = vperm.xlu1 %803, %v592_v39  }
 0x3bf   :  { %v596_v41 = vpop.permute.xlu0 %595 }
 0x3c0   :  { %v603_v42 = vmul.f32 %v596_v41, %v1073_v28  ;;  %v604_v31 = vmul.f32 %v596_v41, %v1075_v49  ;;  %v629_v12 = vmul.f32 %v596_v41, %v1079_v11  ;;  %v630_v47 = vmul.f32 %v596_v41, %v1085_v26  ;;  %v664_v49 = vld [vmem:[%s1184_s4 + $0x30] sm:$0xf]  ;;  %v665_v11 = vld [vmem:[%s1184_s4 + $0x38] sm:$0xf] }
 0x3c3   :  { %v610_v32 = vpop.permute.xlu1 %609 }
 0x3c4   :  { %v617_v55 = vadd.f32 %v610_v32, %v603_v42  ;;  %v618_v56 = vadd.f32 %v610_v32, %v604_v31  ;;  %v633_v44 = vadd.f32 %v629_v12, %v610_v32  ;;  %v634_v14 = vadd.f32 %v630_v47, %v610_v32 }
 0x3c6   :  { %621 = vst [vmem:[%s1184_s4] sm:$0xff] %v617_v55  ;;  %622 = vst [vmem:[%s1184_s4 + $0x8] sm:$0xff] %v618_v56 }
 0x3c7   :  { %666 = vst [vmem:[%s1184_s4 + $0x20] sm:$0xff] %v633_v44  ;;  %667 = vst [vmem:[%s1184_s4 + $0x28] sm:$0xff] %v634_v14  ;;  %v601_v28 = vpop.permute.xlu1 %600 }
 0x3c8   :  { %v605_v26 = vmul.f32 %v601_v28, %v1106_v48  ;;  %v606_v6 = vmul.f32 %v601_v28, %v1111_v51  ;;  %v631_v50 = vmul.f32 %v664_v49, %v601_v28  ;;  %v632_v59 = vmul.f32 %v665_v11, %v601_v28 }
 0x3cb   :  { %v615_v36 = vpop.permute.xlu1 %614 }
 0x3cc   :  { %v619_v58 = vadd.f32 %v615_v36, %v605_v26  ;;  %v620_v60 = vadd.f32 %v615_v36, %v606_v6  ;;  %v635_v54 = vadd.f32 %v631_v50, %v615_v36  ;;  %v636_v61 = vadd.f32 %v632_v59, %v615_v36 }
 0x3ce   :  { %623 = vst [vmem:[%s1184_s4 + $0x10] sm:$0xf] %v619_v58  ;;  %624 = vst [vmem:[%s1184_s4 + $0x18] sm:$0xf] %v620_v60 }
 0x3cf   :  { %668 = vst [vmem:[%s1184_s4 + $0x30] sm:$0xf] %v635_v54  ;;  %669 = vst [vmem:[%s1184_s4 + $0x38] sm:$0xf] %v636_v61 }

</bundles_post_ra>
